<compile_context>
chip_gen: v7x
topology: tpu7x:2x2x1
jax: 0.10.0
libtpu: 0.0.40
codegen_flags: <defaults>
</compile_context>

<pallas_src>
import jax
import jax.numpy as jnp
from jax.experimental import pallas as pl
from jax.experimental.pallas import tpu as pltpu

_LANES = 128
_ACC_ROWS = 8                         # sublanes per partial-sum accumulator
_NUM_ACC = 4                          # [-sum(loss), -sum(loss*pos), count(pos), count(nz)]
_MAX_BLOCK_ROWS = 2048                # (2048,128) f32 = 1 MiB per input per buffer
_VMEM_LIMIT_BYTES = 32 * 1024 * 1024  # 6 MiB of input double-buffers + ample headroom


def _cdiv(a, b):
    return -(-a // b)


def _num_tensorcores():
    """Best-effort TensorCore count (2 on v7x, 1 on v5e/v6e).

    Falls back to 2 when the query/fields are unavailable: on a single-core chip
    the extra 'parallel' split is just a harmless 2-iteration loop (as before).
    """
    try:
        info = pltpu.get_tpu_info()
    except Exception:
        return 2
    for attr in ("num_cores", "num_tensorcores", "tensorcore_count",
                 "core_count", "num_cores_per_chip", "cores_per_chip"):
        v = getattr(info, attr, None)
        if isinstance(v, int) and v >= 1:
            return v
    return 2


def _flatten_pad(x, padded_len):
    flat = x.reshape(-1)
    if flat.shape[0] != padded_len:
        # Only taken for non-128-aligned inputs (multi-block case) or tiny
        # single-block inputs; 128-aligned large inputs skip this full copy.
        flat = jnp.pad(flat, (0, padded_len - flat.shape[0]))
    return flat.reshape(-1, _LANES)


def _make_bce_kernel(block_rows, num_blocks, blocks_per_split, guard_tail,
                     last_valid_rows):
    """Build the reduction kernel for a fixed (static) tiling configuration.

    last_valid_rows: number of real rows in the final block when that block is
    ragged, else None (no in-kernel masking anywhere).
    """

    def partial_sums(pred_ref, targ_ref, scale_ref, mask_rows):
        p = pred_ref[...].astype(jnp.float32)
        t = targ_ref[...].astype(jnp.float32)
        s = scale_ref[...].astype(jnp.float32)

        # torch.nn.BCELoss clamps the log terms at -100.
        log_p = jnp.maximum(jnp.log(p), -100.0)
        log_1mp = jnp.maximum(jnp.log(1.0 - p), -100.0)
        # neg_loss == -BCE(p, t); the wrapper negates the scalar sums once,
        # saving a per-element negate here.
        neg_loss = log_1mp + t * (log_p - log_1mp)

        pos = s > 0.0     # masked_select mask
        nz = s != 0.0     # torch.nonzero(affs_scale) test
        # NOTE: nz can be dropped (use pos_count != 0) if scale >= 0 is guaranteed;
        # kept here to match the original module exactly (scale may be negative).

        if mask_rows is not None:
            # Last ragged block only: mask whole garbage rows past the real data.
            # Static bound -> a single iota + compare; wrapper pad elements within
            # valid rows contribute exactly 0 (pred=targ=scale=0), so no lane mask.
            row = jax.lax.broadcasted_iota(jnp.int32, (block_rows, _LANES), 0)
            valid = row < mask_rows
            neg_loss = jnp.where(valid, neg_loss, 0.0)
            pos = jnp.logical_and(valid, pos)
            nz = jnp.logical_and(valid, nz)

        neg_loss_pos = jnp.where(pos, neg_loss, 0.0)

        def fold(x):
            # (block_rows, 128) -> (8, 128) lane/sublane-wise partial sums (VPU adds).
            return x.reshape(block_rows // _ACC_ROWS, _ACC_ROWS, _LANES).sum(axis=0)

        return (fold(neg_loss),
                fold(neg_loss_pos),
                fold(pos.astype(jnp.float32)),
                fold(nz.astype(jnp.float32)))

    def accumulate(pred_ref, targ_ref, scale_ref, out_ref, mask_rows):
        parts = partial_sums(pred_ref, targ_ref, scale_ref, mask_rows)
        # Direct static-slice accumulation (8-sublane aligned) -> no concat temporary.
        for k, part in enumerate(parts):
            out_ref[0, k * _ACC_ROWS:(k + 1) * _ACC_ROWS, :] += part

    def kernel(pred_ref, targ_ref, scale_ref, out_ref):
        c = pl.program_id(0)   # core-split axis ("parallel")
        i = pl.program_id(1)   # block axis within the split ("arbitrary")

        @pl.when(i == 0)
        def _():
            out_ref[...] = jnp.zeros_like(out_ref)

        blk = c * blocks_per_split + i   # logical block id

        if last_valid_rows is not None:
            # Masked path runs only for the final (ragged) block; every other block
            # takes the mask-free fast path. The guard-tail duplicate (blk >=
            # num_blocks, DMA clamped in the index map) matches neither condition.
            @pl.when(blk == num_blocks - 1)
            def _():
                accumulate(pred_ref, targ_ref, scale_ref, out_ref, last_valid_rows)

            @pl.when(blk < num_blocks - 1)
            def _():
                accumulate(pred_ref, targ_ref, scale_ref, out_ref, None)
        elif guard_tail:
            @pl.when(blk < num_blocks)
            def _():
                accumulate(pred_ref, targ_ref, scale_ref, out_ref, None)
        else:
            accumulate(pred_ref, targ_ref, scale_ref, out_ref, None)

    return kernel


def scaled_bce_loss(affs_prediction, affs_target, affs_scale):
    n = affs_prediction.size
    rows128 = _cdiv(n, _LANES)

    if rows128 <= _MAX_BLOCK_ROWS:
        # Single block: round rows up to a sublane multiple so the in-kernel
        # (rows//8, 8, 128) fold is exact; pad is < 1024 elements (negligible copy).
        rows = _cdiv(rows128, _ACC_ROWS) * _ACC_ROWS
        block_rows = rows
    else:
        # Multi-block: pad only to a single 128-lane row; the ragged last block is
        # handled by the in-kernel row mask (last block only).
        rows = rows128
        block_rows = _MAX_BLOCK_ROWS
    padded_len = rows * _LANES

    pred2d = _flatten_pad(affs_prediction, padded_len)
    targ2d = _flatten_pad(affs_target, padded_len)
    scale2d = _flatten_pad(affs_scale, padded_len)

    num_blocks = _cdiv(rows, block_rows)
    last_valid = rows - (num_blocks - 1) * block_rows
    last_valid_rows = last_valid if last_valid != block_rows else None

    # 2-way split only when the chip has 2 TensorCores (v7x); otherwise 1.
    num_splits = 2 if (num_blocks >= 2 and _num_tensorcores() >= 2) else 1
    blocks_per_split = _cdiv(num_blocks, num_splits)
    guard_tail = num_splits * blocks_per_split != num_blocks

    if guard_tail:
        def in_map(c, i):
            # Keep the DMA in-bounds for the duplicated tail block; compute skipped.
            return (jnp.minimum(c * blocks_per_split + i, num_blocks - 1), 0)
    else:
        def in_map(c, i):
            return (c * blocks_per_split + i, 0)

    in_spec = pl.BlockSpec((block_rows, _LANES), in_map)
    out_spec = pl.BlockSpec((1, _NUM_ACC * _ACC_ROWS, _LANES), lambda c, i: (c, 0, 0))

    kernel = _make_bce_kernel(block_rows, num_blocks, blocks_per_split,
                              guard_tail, last_valid_rows)

    parts = pl.pallas_call(
        kernel,
        out_shape=jax.ShapeDtypeStruct(
            (num_splits, _NUM_ACC * _ACC_ROWS, _LANES), jnp.float32),
        grid_spec=pltpu.PrefetchScalarGridSpec(
            num_scalar_prefetch=0,
            grid=(num_splits, blocks_per_split),
            in_specs=[in_spec, in_spec, in_spec],
            out_specs=out_spec,
        ),
        compiler_params=pltpu.CompilerParams(
            dimension_semantics=("parallel", "arbitrary"),
            vmem_limit_bytes=_VMEM_LIMIT_BYTES,
        ),
    )(pred2d, targ2d, scale2d)

    # Final tiny cross-core / cross-lane reduction in plain JAX.
    # Precision envelope: f32 per-lane partials are exact up to ~2^24 contributions
    # per lane (~1.7e10 total elements).
    sums = parts.sum(axis=(0, 2)).reshape(_NUM_ACC, _ACC_ROWS).sum(axis=1)
    neg_total, neg_masked, pos_count, nonzero_count = (
        sums[0], sums[1], sums[2], sums[3])

    loss_all = (-neg_total) / jnp.float32(n)
    # 0/0 = NaN when scale is nonzero but never > 0, matching torch.mean(empty).
    loss_masked = (-neg_masked) / pos_count
    return jnp.where(nonzero_count != 0.0, loss_masked, loss_all)


def _reference(pred, targ, scale):
    pred = pred.astype(jnp.float32)
    targ = targ.astype(jnp.float32)
    scale = scale.astype(jnp.float32)
    log_p = jnp.maximum(jnp.log(pred), -100.0)
    log_1mp = jnp.maximum(jnp.log(1.0 - pred), -100.0)
    loss = -(targ * log_p + (1.0 - targ) * log_1mp)
    pos = scale > 0.0
    masked_mean = jnp.sum(jnp.where(pos, loss, 0.0)) / jnp.sum(pos.astype(jnp.float32))
    return jnp.where(jnp.any(scale != 0.0), masked_mean, jnp.mean(loss))


if __name__ == "__main__":
    key = jax.random.PRNGKey(0)
    k1, k2, k3, k4, k5, k6, k7, k8, k9 = jax.random.split(key, 9)

    # 1) Small NCHW shapes consistent with an affinity-prediction head (single block).
    shape = (2, 4, 16, 16)
    affs_prediction = jax.nn.sigmoid(jax.random.normal(k1, shape, dtype=jnp.float32))
    affs_target = (jax.random.uniform(k2, shape) > 0.5).astype(jnp.float32)
    affs_scale = jnp.where(jax.random.uniform(k3, shape) > 0.5,
                           jnp.float32(1.0), jnp.float32(0.0))

    loss = scaled_bce_loss(affs_prediction, affs_target, affs_scale)
    jax.block_until_ready(loss)
    ref = _reference(affs_prediction, affs_target, affs_scale)
    assert jnp.allclose(loss, ref, rtol=1e-5, atol=1e-6), (loss, ref)

    # 2) "No nonzero scale" branch.
    zero_scale = jnp.zeros(shape, jnp.float32)
    loss0 = scaled_bce_loss(affs_prediction, affs_target, zero_scale)
    jax.block_until_ready(loss0)
    ref0 = _reference(affs_prediction, affs_target, zero_scale)
    assert jnp.allclose(loss0, ref0, rtol=1e-5, atol=1e-6), (loss0, ref0)

    # 3) Non-128-aligned multi-block case: wrapper pad + ragged last block + core split.
    shape_big = (5, 4, 127, 129)  # 327,660 elements -> 2560 rows -> 2 blocks of 2048
    pred_b = jax.nn.sigmoid(jax.random.normal(k4, shape_big, dtype=jnp.float32))
    targ_b = (jax.random.uniform(k5, shape_big) > 0.5).astype(jnp.float32)
    scale_b = jnp.where(jax.random.uniform(k6, shape_big) > 0.5,
                        jnp.float32(2.0), jnp.float32(0.0))
    loss_b = scaled_bce_loss(pred_b, targ_b, scale_b)
    jax.block_until_ready(loss_b)
    ref_b = _reference(pred_b, targ_b, scale_b)
    assert jnp.allclose(loss_b, ref_b, rtol=1e-5, atol=1e-5), (loss_b, ref_b)

    # 4) 128-aligned multi-block case (no wrapper pad copy), odd block count so the
    #    guard-tail path is exercised when the 2-way split is active.
    shape_al = (9, 4, 128, 128)  # 589,824 elements -> 4608 rows -> 3 blocks of 2048
    pred_a = jax.nn.sigmoid(jax.random.normal(k7, shape_al, dtype=jnp.float32))
    targ_a = (jax.random.uniform(k8, shape_al) > 0.5).astype(jnp.float32)
    scale_a = jnp.where(jax.random.uniform(k9, shape_al) > 0.7,
                        jnp.float32(1.0), jnp.float32(0.0))
    loss_a = scaled_bce_loss(pred_a, targ_a, scale_a)
    jax.block_until_ready(loss_a)
    ref_a = _reference(pred_a, targ_a, scale_a)
    assert jnp.allclose(loss_a, ref_a, rtol=2e-5, atol=1e-5), (loss_a, ref_a)

    # 5) Narrow-dtype fast path: bf16 predictions, f32 target/scale (in-kernel cast).
    pred_bf16 = affs_prediction.astype(jnp.bfloat16)
    loss_n = scaled_bce_loss(pred_bf16, affs_target, affs_scale)
    jax.block_until_ready(loss_n)
    ref_n = _reference(pred_bf16, affs_target, affs_scale)
    assert jnp.allclose(loss_n, ref_n, rtol=1e-4, atol=1e-5), (loss_n, ref_n)

    print("KERNEL_OK")
</pallas_src>

<mosaic_0001>
module attributes {stable_mosaic.version = 11 : i64} {
  func.func @kernel(%arg0: i32, %arg1: i32, %arg2: memref<16x128xf32, #tpu.memory_space<vmem>>, %arg3: memref<16x128xf32, #tpu.memory_space<vmem>>, %arg4: memref<16x128xf32, #tpu.memory_space<vmem>>, %arg5: memref<1x32x128xf32, #tpu.memory_space<vmem>>) attributes {dimension_semantics = [#tpu.dimension_semantics<parallel>, #tpu.dimension_semantics<arbitrary>], iteration_bounds = array<i64: 1, 1>, scalar_prefetch = 0 : i64, scratch_operands = 0 : i64, tpu.core_type = #tpu.core_type<tc>, window_params = [{transform_indices = @transform_0, window_bounds = array<i64: 16, 128>}, {transform_indices = @transform_1, window_bounds = array<i64: 16, 128>}, {transform_indices = @transform_2, window_bounds = array<i64: 16, 128>}, {transform_indices = @transform_3, window_bounds = array<i64: 1, 32, 128>}]} {
    %c0_i32 = arith.constant 0 : i32
    %0 = arith.cmpi eq, %arg1, %c0_i32 : i32
    %1 = arith.extui %0 : i1 to i32
    %c0_i32_0 = arith.constant 0 : i32
    %2 = arith.cmpi ne, %1, %c0_i32_0 : i32
    scf.if %2 {
      %cst_36 = arith.constant 0.000000e+00 : f32
      %59 = vector.broadcast %cst_36 : f32 to vector<1x32x128xf32>
      %c0_37 = arith.constant 0 : index
      %c0_38 = arith.constant 0 : index
      %c0_39 = arith.constant 0 : index
      %60 = vector.load %arg5[%c0_37, %c0_38, %c0_39] : memref<1x32x128xf32, #tpu.memory_space<vmem>>, vector<1x32x128xf32>
      tpu.vector_store %arg5[%c0_37, %c0_38, %c0_39], %59 {strides = array<i32>} : memref<1x32x128xf32, #tpu.memory_space<vmem>>, vector<1x32x128xf32>,
    } else {
    }
    %c0 = arith.constant 0 : index
    %c0_1 = arith.constant 0 : index
    %3 = vector.load %arg2[%c0, %c0_1] : memref<16x128xf32, #tpu.memory_space<vmem>>, vector<16x128xf32>
    %c0_2 = arith.constant 0 : index
    %c0_3 = arith.constant 0 : index
    %4 = vector.load %arg3[%c0_2, %c0_3] : memref<16x128xf32, #tpu.memory_space<vmem>>, vector<16x128xf32>
    %c0_4 = arith.constant 0 : index
    %c0_5 = arith.constant 0 : index
    %5 = vector.load %arg4[%c0_4, %c0_5] : memref<16x128xf32, #tpu.memory_space<vmem>>, vector<16x128xf32>
    %6 = math.log %3 : vector<16x128xf32>
    %cst = arith.constant -1.000000e+02 : f32
    %7 = vector.broadcast %cst : f32 to vector<16x128xf32>
    %8 = arith.maximumf %6, %7 : vector<16x128xf32>
    %cst_6 = arith.constant 1.000000e+00 : f32
    %9 = vector.broadcast %cst_6 : f32 to vector<16x128xf32>
    %10 = arith.subf %9, %3 : vector<16x128xf32>
    %11 = math.log %10 : vector<16x128xf32>
    %cst_7 = arith.constant -1.000000e+02 : f32
    %12 = vector.broadcast %cst_7 : f32 to vector<16x128xf32>
    %13 = arith.maximumf %11, %12 : vector<16x128xf32>
    %14 = arith.subf %8, %13 : vector<16x128xf32>
    %15 = arith.mulf %4, %14 : vector<16x128xf32>
    %16 = arith.addf %13, %15 : vector<16x128xf32>
    %cst_8 = arith.constant 0.000000e+00 : f32
    %17 = vector.broadcast %cst_8 : f32 to vector<16x128xf32>
    %18 = arith.cmpf ogt, %5, %17 : vector<16x128xf32>
    %cst_9 = arith.constant 0.000000e+00 : f32
    %19 = vector.broadcast %cst_9 : f32 to vector<16x128xf32>
    %20 = arith.cmpf one, %5, %19 : vector<16x128xf32>
    %cst_10 = arith.constant 0.000000e+00 : f32
    %21 = vector.broadcast %cst_10 : f32 to vector<16x128xf32>
    %22 = arith.select %18, %16, %21 : vector<16x128xi1>, vector<16x128xf32>
    %23 = vector.shape_cast %16 : vector<16x128xf32> to vector<2x8x128xf32>
    %cst_11 = arith.constant dense<0.000000e+00> : vector<8x128xf32>
    %24 = vector.multi_reduction <add>, %23, %cst_11 [0] : vector<2x8x128xf32> to vector<8x128xf32>
    %25 = vector.shape_cast %22 : vector<16x128xf32> to vector<2x8x128xf32>
    %cst_12 = arith.constant dense<0.000000e+00> : vector<8x128xf32>
    %26 = vector.multi_reduction <add>, %25, %cst_12 [0] : vector<2x8x128xf32> to vector<8x128xf32>
    %27 = arith.extui %18 : vector<16x128xi1> to vector<16x128xi32>
    %28 = arith.sitofp %27 : vector<16x128xi32> to vector<16x128xf32>
    %29 = vector.shape_cast %28 : vector<16x128xf32> to vector<2x8x128xf32>
    %cst_13 = arith.constant dense<0.000000e+00> : vector<8x128xf32>
    %30 = vector.multi_reduction <add>, %29, %cst_13 [0] : vector<2x8x128xf32> to vector<8x128xf32>
    %31 = arith.extui %20 : vector<16x128xi1> to vector<16x128xi32>
    %32 = arith.sitofp %31 : vector<16x128xi32> to vector<16x128xf32>
    %33 = vector.shape_cast %32 : vector<16x128xf32> to vector<2x8x128xf32>
    %cst_14 = arith.constant dense<0.000000e+00> : vector<8x128xf32>
    %34 = vector.multi_reduction <add>, %33, %cst_14 [0] : vector<2x8x128xf32> to vector<8x128xf32>
    %c0_15 = arith.constant 0 : index
    %c0_16 = arith.constant 0 : index
    %c0_17 = arith.constant 0 : index
    %35 = vector.load %arg5[%c0_15, %c0_16, %c0_17] : memref<1x32x128xf32, #tpu.memory_space<vmem>>, vector<1x8x128xf32>
    %36 = vector.shape_cast %35 : vector<1x8x128xf32> to vector<8x128xf32>
    %37 = arith.addf %36, %24 : vector<8x128xf32>
    %c0_18 = arith.constant 0 : index
    %c0_19 = arith.constant 0 : index
    %c0_20 = arith.constant 0 : index
    %38 = vector.load %arg5[%c0_18, %c0_19, %c0_20] : memref<1x32x128xf32, #tpu.memory_space<vmem>>, vector<1x8x128xf32>
    %39 = vector.shape_cast %38 : vector<1x8x128xf32> to vector<8x128xf32>
    %40 = vector.shape_cast %37 : vector<8x128xf32> to vector<1x8x128xf32>
    tpu.vector_store %arg5[%c0_18, %c0_19, %c0_20], %40 {strides = array<i32>} : memref<1x32x128xf32, #tpu.memory_space<vmem>>, vector<1x8x128xf32>,
    %c0_21 = arith.constant 0 : index
    %c8 = arith.constant 8 : index
    %c0_22 = arith.constant 0 : index
    %41 = vector.load %arg5[%c0_21, %c8, %c0_22] : memref<1x32x128xf32, #tpu.memory_space<vmem>>, vector<1x8x128xf32>
    %42 = vector.shape_cast %41 : vector<1x8x128xf32> to vector<8x128xf32>
    %43 = arith.addf %42, %26 : vector<8x128xf32>
    %c0_23 = arith.constant 0 : index
    %c8_24 = arith.constant 8 : index
    %c0_25 = arith.constant 0 : index
    %44 = vector.load %arg5[%c0_23, %c8_24, %c0_25] : memref<1x32x128xf32, #tpu.memory_space<vmem>>, vector<1x8x128xf32>
    %45 = vector.shape_cast %44 : vector<1x8x128xf32> to vector<8x128xf32>
    %46 = vector.shape_cast %43 : vector<8x128xf32> to vector<1x8x128xf32>
    tpu.vector_store %arg5[%c0_23, %c8_24, %c0_25], %46 {strides = array<i32>} : memref<1x32x128xf32, #tpu.memory_space<vmem>>, vector<1x8x128xf32>,
    %c0_26 = arith.constant 0 : index
    %c16 = arith.constant 16 : index
    %c0_27 = arith.constant 0 : index
    %47 = vector.load %arg5[%c0_26, %c16, %c0_27] : memref<1x32x128xf32, #tpu.memory_space<vmem>>, vector<1x8x128xf32>
    %48 = vector.shape_cast %47 : vector<1x8x128xf32> to vector<8x128xf32>
    %49 = arith.addf %48, %30 : vector<8x128xf32>
    %c0_28 = arith.constant 0 : index
    %c16_29 = arith.constant 16 : index
    %c0_30 = arith.constant 0 : index
    %50 = vector.load %arg5[%c0_28, %c16_29, %c0_30] : memref<1x32x128xf32, #tpu.memory_space<vmem>>, vector<1x8x128xf32>
    %51 = vector.shape_cast %50 : vector<1x8x128xf32> to vector<8x128xf32>
    %52 = vector.shape_cast %49 : vector<8x128xf32> to vector<1x8x128xf32>
    tpu.vector_store %arg5[%c0_28, %c16_29, %c0_30], %52 {strides = array<i32>} : memref<1x32x128xf32, #tpu.memory_space<vmem>>, vector<1x8x128xf32>,
    %c0_31 = arith.constant 0 : index
    %c24 = arith.constant 24 : index
    %c0_32 = arith.constant 0 : index
    %53 = vector.load %arg5[%c0_31, %c24, %c0_32] : memref<1x32x128xf32, #tpu.memory_space<vmem>>, vector<1x8x128xf32>
    %54 = vector.shape_cast %53 : vector<1x8x128xf32> to vector<8x128xf32>
    %55 = arith.addf %54, %34 : vector<8x128xf32>
    %c0_33 = arith.constant 0 : index
    %c24_34 = arith.constant 24 : index
    %c0_35 = arith.constant 0 : index
    %56 = vector.load %arg5[%c0_33, %c24_34, %c0_35] : memref<1x32x128xf32, #tpu.memory_space<vmem>>, vector<1x8x128xf32>
    %57 = vector.shape_cast %56 : vector<1x8x128xf32> to vector<8x128xf32>
    %58 = vector.shape_cast %55 : vector<8x128xf32> to vector<1x8x128xf32>
    tpu.vector_store %arg5[%c0_33, %c24_34, %c0_35], %58 {strides = array<i32>} : memref<1x32x128xf32, #tpu.memory_space<vmem>>, vector<1x8x128xf32>,
    return
  }
  func.func @transform_0(%arg0: i32, %arg1: i32) -> (i32, i32) {
    %c1_i32 = arith.constant 1 : i32
    %0 = arith.muli %arg0, %c1_i32 : i32
    %1 = arith.addi %0, %arg1 : i32
    %c0_i32 = arith.constant 0 : i32
    %c0_i32_0 = arith.constant 0 : i32
    return %1, %c0_i32 : i32, i32
  }
  func.func @transform_1(%arg0: i32, %arg1: i32) -> (i32, i32) {
    %c1_i32 = arith.constant 1 : i32
    %0 = arith.muli %arg0, %c1_i32 : i32
    %1 = arith.addi %0, %arg1 : i32
    %c0_i32 = arith.constant 0 : i32
    %c0_i32_0 = arith.constant 0 : i32
    return %1, %c0_i32 : i32, i32
  }
  func.func @transform_2(%arg0: i32, %arg1: i32) -> (i32, i32) {
    %c1_i32 = arith.constant 1 : i32
    %0 = arith.muli %arg0, %c1_i32 : i32
    %1 = arith.addi %0, %arg1 : i32
    %c0_i32 = arith.constant 0 : i32
    %c0_i32_0 = arith.constant 0 : i32
    return %1, %c0_i32 : i32, i32
  }
  func.func @transform_3(%arg0: i32, %arg1: i32) -> (i32, i32, i32) {
    %c0_i32 = arith.constant 0 : i32
    %c0_i32_0 = arith.constant 0 : i32
    %c0_i32_1 = arith.constant 0 : i32
    return %arg0, %c0_i32, %c0_i32_0 : i32, i32, i32
  }
}

</mosaic_0001>

<bundles_post_ra>
// kernel: tpu_custom_call.1
= control target key start
LH: loop header
LB: loop body
LE: loop exit
PB: predicated region body
PF: predicated region fallthrough
CT: control target
= control target key end

     0   :  { %8 = vsyncpa [#allocation3], 0  ;;  %s367_s0 = inlined_call_operand.hbm [shape: f32[16,128], index: 0, kind: input, shape index: {}]   ;;  %s368_s1 = inlined_call_operand.hbm [shape: f32[16,128], index: 1, kind: input, shape index: {}]   ;;  %s369_s2 = inlined_call_operand.hbm [shape: f32[16,128], index: 2, kind: input, shape index: {}]   ;;  %s370_s3 = inlined_call_operand.hbm [shape: f32[1,32,128], index: 3, kind: output, shape index: {}]  }
   0x1   :  { %9 = vsyncpa [#allocation6], 0 }
   0x2   :  { %10 = vsyncpa [#allocation4], 0  ;;  %s269_s12 = smov [#allocation5]   ;;  %s270_s14 = smov [#allocation2]  }
   0x3   :  { %s36_s13 = sshll.u32 %s269_s12, 4  ;;  %s20_s15 = sshll.u32 %s270_s14, 4  ;;  %s37_s13 = int_to_ptr.vmem [resolvable:$true] %s36_s13  ;;  %s296_s15 = int_to_ptr.vmem [resolvable:$true] %s20_s15 }
   0x4   :  { %s175_s18 = scalar_lea.hbm %s368_s1, 256 }
   0x5   :  { %p176_p0 = scmp.ne.s32.totalorder %s368_s1, %s175_s18  ;;  %p179_p1 = scmp.lt.u32.totalorder %s175_s18, %s368_s1 }
   0x7   :  { %p181_p2 = pnand %p179_p1, %p176_p0 }
   0x9   :  { %184 = shalt.err (!%p181_p2)
}
   0xa   :  { %s185_s23 = scalar_lea.vmem %s37_s13, 256  ;;  %p190_p4 = scmp.lt.s32.totalorder %s37_s13, %s37_s13 }
   0xb   :  { %p186_p3 = scmp.ne.s32.totalorder %s37_s13, %s185_s23  ;;  %p191_p5 = scmp.lt.s32.totalorder %s185_s23, %s185_s23 }
   0xd   :  { %p192_p6 = por %p191_p5, %p190_p4 }
   0xf   :  { %p193_p7 = pnand %p192_p6, %p186_p3 }
  0x11   :  { %196 = shalt.err (!%p193_p7)
}
  0x12   :  { %s271_s24 = smov 128   ;;  %s272_s25 = smov 8  }
  0x13   :  { %42 = dma.hbm_to_vmem [thread:$0]  %s368_s1, 256, %s37_s13, [#allocation6], %s271_s24, %s271_s24, %s272_s25  }
  0x14   :  { %s197_s30 = scalar_lea.hbm %s367_s0, 256 }
  0x15   :  { %p198_p8 = scmp.ne.s32.totalorder %s367_s0, %s197_s30  ;;  %p201_p9 = scmp.lt.u32.totalorder %s197_s30, %s367_s0 }
  0x17   :  { %p203_p10 = pnand %p201_p9, %p198_p8 }
  0x19   :  { %206 = shalt.err (!%p203_p10)
}
  0x1a   :  { %s207_s8 = scalar_lea.vmem %s296_s15, 256  ;;  %p212_p12 = scmp.lt.s32.totalorder %s296_s15, %s296_s15 }
  0x1b   :  { %p208_p11 = scmp.ne.s32.totalorder %s296_s15, %s207_s8  ;;  %p213_p13 = scmp.lt.s32.totalorder %s207_s8, %s207_s8 }
  0x1d   :  { %p214_p0 = por %p213_p13, %p212_p12 }
  0x1f   :  { %p215_p1 = pnand %p214_p0, %p208_p11 }
  0x21   :  { %218 = shalt.err (!%p215_p1)
}
  0x22   :  { %26 = dma.hbm_to_vmem [thread:$0]  %s367_s0, 256, %s296_s15, [#allocation3], %s271_s24, %s271_s24, %s272_s25  }
  0x23   :  { %s273_s10 = smov [#allocation7]   ;;  %s219_s14 = scalar_lea.hbm %s369_s2, 256 }
  0x24   :  { %s52_s11 = sshll.u32 %s273_s10, 4  ;;  %p220_p2 = scmp.ne.s32.totalorder %s369_s2, %s219_s14  ;;  %s53_s11 = int_to_ptr.vmem [resolvable:$true] %s52_s11 }
  0x25   :  { %p223_p3 = scmp.lt.u32.totalorder %s219_s14, %s369_s2 }
  0x27   :  { %p225_p4 = pnand %p223_p3, %p220_p2 }
  0x29   :  { %228 = shalt.err (!%p225_p4)
}
  0x2a   :  { %s229_s20 = scalar_lea.vmem %s53_s11, 256  ;;  %p234_p6 = scmp.lt.s32.totalorder %s53_s11, %s53_s11 }
  0x2b   :  { %p230_p5 = scmp.ne.s32.totalorder %s53_s11, %s229_s20  ;;  %p235_p7 = scmp.lt.s32.totalorder %s229_s20, %s229_s20 }
  0x2d   :  { %p236_p8 = por %p235_p7, %p234_p6 }
  0x2f   :  { %p237_p9 = pnand %p236_p8, %p230_p5 }
  0x31   :  { %240 = shalt.err (!%p237_p9)
}
  0x32   :  { %58 = dma.hbm_to_vmem [thread:$0]  %s369_s2, 256, %s53_s11, [#allocation6], %s271_s24, %s271_s24, %s272_s25  }
  0x33   :  { %263 = dma.done.wait [#allocation3], 256  }
  0x34   :  { %264 = vsyncadd [#allocation3], 4294967040 }
  0x35   :  { %265 = dma.done.wait [#allocation6], 512  }
  0x36   :  { %266 = vsyncadd [#allocation6], 4294966784  ;;  %v82_v0 = vld [vmem:[#allocation2] sm:$0xff]  ;;  %v83_v1 = vld [vmem:[#allocation2 + $0x8] sm:$0xff]  ;;  %v274_v6 = vmov 0.0   ;;  %s275_s2 = smov [#allocation8]  }
  0x37   :  { %167 = vlog2.f32 %v82_v0  ;;  %v94_v2 = vsub.f32 1.0, %v82_v0  ;;  %v95_v3 = vsub.f32 1.0, %v83_v1  ;;  %v86_v4 = vld [vmem:[#allocation7] sm:$0xff]  ;;  %v87_v5 = vld [vmem:[#allocation7 + $0x8] sm:$0xff]  ;;  %v84_v24 = vld [vmem:[#allocation5] sm:$0xff]  ;;  %s143_s21 = sshll.u32 %s275_s2, 4  ;;  %s144_s21 = int_to_ptr.vmem [resolvable:$true] %s143_s21 }
  0x38   :  { %169 = vlog2.f32 %v83_v1  ;;  %vm108_vm0 = vcmp.gt.f32.partialorder %v86_v4, 0.0  ;;  %vm109_vm1 = vcmp.gt.f32.partialorder %v87_v5, 0.0  ;;  %vm110_vm2 = vcmp.ne.f32.partialorder %v86_v4, 0.0  ;;  %v85_v26 = vld [vmem:[#allocation5 + $0x8] sm:$0xff]  ;;  %s241_s22 = scalar_lea.vmem %s144_s21, 512  ;;  %p246_p11 = scmp.lt.s32.totalorder %s144_s21, %s144_s21 }
  0x39   :  { %171 = vlog2.f32 %v94_v2  ;;  %v156_v7 = vsel %vm108_vm0, 1.0, %v274_v6  ;;  %v157_v8 = vsel %vm109_vm1, 1.0, %v274_v6  ;;  %vm111_vm3 = vcmp.ne.f32.partialorder %v87_v5, 0.0  ;;  %p242_p10 = scmp.ne.s32.totalorder %s144_s21, %s241_s22  ;;  %p247_p12 = scmp.lt.s32.totalorder %s241_s22, %s241_s22 }
  0x3a   :  { %173 = vlog2.f32 %v95_v3  ;;  %v120_v9 = vadd.f32 %v157_v8, %v156_v7  ;;  %v158_v10 = vsel %vm110_vm2, 1.0, %v274_v6  ;;  %v159_v11 = vsel %vm111_vm3, 1.0, %v274_v6 }
  0x3b   :  { %v125_v12 = vadd.f32 %v159_v11, %v158_v10  ;;  %p248_p13 = por %p247_p12, %p246_p11 }
  0x3c   :  { %134 = vst [vmem:[#allocation8 + $0x10] sm:$0xff] %v120_v9 }
  0x3d   :  { %137 = vst [vmem:[#allocation8 + $0x18] sm:$0xff] %v125_v12  ;;  %p249_p0 = pnand %p248_p13, %p242_p10 }
  0x41   :  { %v168_v13 = vpop.eup %167 }
  0x42   :  { %v170_v14 = vpop.eup %169  ;;  %v89_v15 = vmul.f32 0.6931472, %v168_v13 }
  0x43   :  { %v172_v16 = vpop.eup %171  ;;  %v91_v17 = vmul.f32 0.6931472, %v170_v14 }
  0x44   :  { %v174_v18 = vpop.eup %173  ;;  %v92_v19 = vmax.f32 %v89_v15, -100.0  ;;  %v97_v20 = vmul.f32 0.6931472, %v172_v16 }
  0x45   :  { %v93_v21 = vmax.f32 %v91_v17, -100.0  ;;  %v99_v22 = vmul.f32 0.6931472, %v174_v18 }
  0x46   :  { %v100_v23 = vmax.f32 %v97_v20, -100.0 }
  0x47   :  { %v101_v25 = vmax.f32 %v99_v22, -100.0 }
  0x48   :  { %v102_v27 = vsub.f32 %v92_v19, %v100_v23 }
  0x49   :  { %v103_v28 = vsub.f32 %v93_v21, %v101_v25 }
  0x4a   :  { %v104_v29 = vmul.f32 %v102_v27, %v84_v24 }
  0x4b   :  { %v105_v30 = vmul.f32 %v103_v28, %v85_v26 }
  0x4c   :  { %v106_v31 = vadd.f32 %v104_v29, %v100_v23 }
  0x4d   :  { %v107_v32 = vadd.f32 %v105_v30, %v101_v25 }
  0x4e   :  { %v112_v33 = vsel %vm108_vm0, %v106_v31, 0.0 }
  0x4f   :  { %v114_v34 = vadd.f32 %v107_v32, %v106_v31  ;;  %v113_v35 = vsel %vm109_vm1, %v107_v32, 0.0 }
  0x50   :  { %v115_v36 = vadd.f32 %v113_v35, %v112_v33 }
  0x51   :  { %128 = vst [vmem:[#allocation8] sm:$0xff] %v114_v34 }
  0x52   :  { %131 = vst [vmem:[#allocation8 + $0x8] sm:$0xff] %v115_v36 }
  0x53   :  { %252 = shalt.err (!%p249_p0)
}
  0x54   :  { %s253_s27 = scalar_lea.hbm %s370_s3, 512 }
  0x55   :  { %p254_p1 = scmp.ne.s32.totalorder %s370_s3, %s253_s27  ;;  %p257_p2 = scmp.lt.u32.totalorder %s253_s27, %s370_s3 }
  0x57   :  { %p259_p3 = pnand %p257_p2, %p254_p1 }
  0x59   :  { %262 = shalt.err (!%p259_p3)
}
  0x5a   :  { %149 = dma.vmem_to_hbm [thread:$0]  %s144_s21, 512, %s370_s3, [#allocation4], %s271_s24, %s271_s24, %s272_s25  }
  0x5b   :  { %267 = dma.done.wait [#allocation4], 512  }
  0x5c   :  { %268 = vsyncadd [#allocation4], 4294966784 }
  0x5d   :  { %153 = vsyncpa [#allocation3], 1 }
  0x5e   :  { %154 = vsyncpa [#allocation6], 1 }
  0x5f   :  { %155 = vsyncpa [#allocation4], 1 }

</bundles_post_ra>
